<compile_context>
chip_gen: v6e
topology: v6e:2x2x1
jax: 0.10.0
libtpu: 0.0.40
codegen_flags: <defaults>
</compile_context>

<pallas_src>
import functools

import jax
import jax.numpy as jnp
from jax.experimental import pallas as pl
from jax.experimental.pallas import tpu as pltpu


def _round_up(x, m):
    return (x + m - 1) // m * m


# ----------------------------------------------------------------------------
# Fused stacked-LSTM kernel: grid axis = layer (sequential).
#   gates = [x_or_prev_h, h_l] @ W_l + b_l          (one MXU matmul)
#   i, f, g, o = 128-aligned gate blocks (sigmoid, sigmoid, tanh, sigmoid)
#   c' = f*c + i*g ;  h' = o*tanh(c')
# The (B_pad, K_pad) scratch `xh_ref` (weight dtype) holds the fused matmul
# input and carries h across layers entirely in VMEM.
# ----------------------------------------------------------------------------
def _stacked_lstm_kernel(x_ref, h0_ref, c0_ref, w_ref, b_ref,
                         h1_ref, c1_ref, xh_ref, *, h_pad, kin_pad):
    l = pl.program_id(0)

    @pl.when(l == 0)
    def _():
        # Layer-0 input: the (padded) embedding vector.
        xh_ref[:, :kin_pad] = x_ref[...].astype(xh_ref.dtype)

    # Recurrent half of the fused matmul input for this layer.
    xh_ref[:, kin_pad:] = h0_ref[0].astype(xh_ref.dtype)

    c = c0_ref[0].astype(jnp.float32)

    # Single MXU matmul in the weights' native dtype, f32 accumulation.
    gates = jnp.dot(xh_ref[...], w_ref[0],
                    preferred_element_type=jnp.float32)
    gates = gates + b_ref[0].astype(jnp.float32)   # (B_pad, 4*H_pad)

    # 128-lane-aligned gate blocks (H padded to H_pad = multiple of 128).
    i_g = jax.nn.sigmoid(gates[:, 0 * h_pad:1 * h_pad])
    f_g = jax.nn.sigmoid(gates[:, 1 * h_pad:2 * h_pad])
    g_g = jnp.tanh(gates[:, 2 * h_pad:3 * h_pad])
    o_g = jax.nn.sigmoid(gates[:, 3 * h_pad:4 * h_pad])

    c_new = f_g * c + i_g * g_g
    h_new = o_g * jnp.tanh(c_new)

    h1_ref[0] = h_new.astype(h1_ref.dtype)
    c1_ref[0] = c_new.astype(c1_ref.dtype)

    # Next layer consumes this layer's h as its input (dropout == identity at
    # inference). Only needed if there is a next layer. Stays resident in VMEM.
    # (No zero-fill of xh[:, h_pad:kin_pad] needed: W rows beyond each layer's
    #  real input width are zero in prepare_params.)
    @pl.when(l + 1 < pl.num_programs(0))
    def _():
        xh_ref[:, :h_pad] = h_new.astype(xh_ref.dtype)


# ----------------------------------------------------------------------------
# One-time parameter preprocessing (hoisted out of the hot path):
#   - transpose to (in_features, 4H), fuse b_ih + b_hh
#   - concatenate input/recurrent weights along K
#   - pad every gate block to a 128-lane tile and K to Din_pad + H_pad
#   - stack over layers so a single BlockSpec index_map selects the layer
#   - store in bf16 by default (weight-streaming bound kernel -> ~2x fewer
#     HBM bytes); accumulation stays f32 in the kernel.
# ----------------------------------------------------------------------------
def prepare_params(params, input_size, hidden_size, dtype=jnp.bfloat16):
    H = hidden_size
    H_pad = _round_up(H, 128)
    Din_pad = _round_up(max(input_size, hidden_size), 128)
    K_pad = Din_pad + H_pad

    Ws, Bs = [], []
    for (w_ih, w_hh, b_ih, b_hh) in params:
        d_in = w_ih.shape[1]
        w_ih_t = jnp.transpose(w_ih)                       # (d_in, 4H)
        w_hh_t = jnp.transpose(w_hh)                       # (H,    4H)
        bias = (b_ih + b_hh).reshape(1, 4 * H)

        W = jnp.zeros((K_pad, 4 * H_pad), jnp.float32)
        b = jnp.zeros((1, 4 * H_pad), jnp.float32)
        for g in range(4):
            W = W.at[:d_in, g * H_pad:g * H_pad + H].set(
                w_ih_t[:, g * H:(g + 1) * H])
            W = W.at[Din_pad:Din_pad + H, g * H_pad:g * H_pad + H].set(
                w_hh_t[:, g * H:(g + 1) * H])
            b = b.at[:, g * H_pad:g * H_pad + H].set(bias[:, g * H:(g + 1) * H])
        Ws.append(W.astype(dtype))
        Bs.append(b.astype(dtype))
    return jnp.stack(Ws), jnp.stack(Bs)            # (L,K_pad,4H_pad), (L,1,4H_pad)


# ----------------------------------------------------------------------------
# Padding helpers (do these ONCE per decode loop, not per step, for h/c).
# ----------------------------------------------------------------------------
def pad_x(x, din_pad, b_pad):
    B, D = x.shape
    return jnp.zeros((b_pad, din_pad), x.dtype).at[:B, :D].set(x)


def pad_state(h, c, h_pad, b_pad):
    L, B, H = h.shape
    h_p = jnp.zeros((L, b_pad, h_pad), h.dtype).at[:, :B, :H].set(h)
    c_p = jnp.zeros((L, b_pad, h_pad), c.dtype).at[:, :B, :H].set(c)
    return h_p, c_p


# ----------------------------------------------------------------------------
# Hot path: one decode step on persistent PADDED state. h/c are updated
# in place via input_output_aliases (h0->h1, c0->c1).
# ----------------------------------------------------------------------------
def stacked_lstm_step_padded(x_p, h0_p, c0_p, w_stack, b_stack):
    L, K_pad, fourH = w_stack.shape
    H_pad = fourH // 4
    Din_pad = K_pad - H_pad
    B_pad = x_p.shape[0]

    kernel = functools.partial(_stacked_lstm_kernel,
                               h_pad=H_pad, kin_pad=Din_pad)

    w_itemsize = w_stack.dtype.itemsize
    st_itemsize = x_p.dtype.itemsize
    w_block_bytes = K_pad * fourH * w_itemsize

    if 2 * w_block_bytes > 32 * 1024 * 1024:
        # Very large H: a double-buffered W block would dominate (or exceed)
        # VMEM, especially on v7x (64 MiB). Single-buffer it; at M=8 the lost
        # overlap is negligible (the kernel is DMA-bound either way).
        w_spec = pl.BlockSpec((1, K_pad, fourH), lambda l: (l, 0, 0),
                              pipeline_mode=pl.Buffered(1))
        w_bufs = 1
    else:
        w_spec = pl.BlockSpec((1, K_pad, fourH), lambda l: (l, 0, 0))
        w_bufs = 2

    est_vmem = (
        2 * B_pad * Din_pad * st_itemsize            # x (double-buffered)
        + 4 * 2 * B_pad * H_pad * st_itemsize        # h0, c0, h1, c1
        + w_bufs * w_block_bytes                     # W
        + 2 * 8 * fourH * w_itemsize                 # b (sublane-padded)
        + B_pad * K_pad * w_itemsize                 # xh scratch
    )
    vmem_limit = max(4 * 1024 * 1024, int(1.5 * est_vmem) + (1 << 20))
    vmem_limit = min(vmem_limit, 64 * 1024 * 1024)   # stay within v7x physical

    h1_p, c1_p = pl.pallas_call(
        kernel,
        out_shape=(
            jax.ShapeDtypeStruct(h0_p.shape, h0_p.dtype),
            jax.ShapeDtypeStruct(c0_p.shape, c0_p.dtype),
        ),
        grid_spec=pltpu.PrefetchScalarGridSpec(
            num_scalar_prefetch=0,
            grid=(L,),
            in_specs=[
                pl.BlockSpec((B_pad, Din_pad), lambda l: (0, 0)),      # x (layer 0)
                pl.BlockSpec((1, B_pad, H_pad), lambda l: (l, 0, 0)),  # h_0[l]
                pl.BlockSpec((1, B_pad, H_pad), lambda l: (l, 0, 0)),  # c_0[l]
                w_spec,                                                # W[l]
                pl.BlockSpec((1, 1, fourH), lambda l: (l, 0, 0)),      # b[l]
            ],
            out_specs=[
                pl.BlockSpec((1, B_pad, H_pad), lambda l: (l, 0, 0)),
                pl.BlockSpec((1, B_pad, H_pad), lambda l: (l, 0, 0)),
            ],
            scratch_shapes=[pltpu.VMEM((B_pad, K_pad), w_stack.dtype)],
        ),
        input_output_aliases={1: 0, 2: 1},           # h0 -> h1, c0 -> c1 in place
        compiler_params=pltpu.CompilerParams(
            dimension_semantics=("arbitrary",),
            vmem_limit_bytes=vmem_limit),
    )(x_p, h0_p, c0_p, w_stack, b_stack)
    return h1_p, c1_p


# ----------------------------------------------------------------------------
# Convenience wrapper with PyTorch StackedLSTM.forward semantics (unpadded
# in/out) -- used for the correctness check. For a real decode loop keep the
# padded state and call stacked_lstm_step_padded directly.
# ----------------------------------------------------------------------------
def stacked_lstm_forward(x, hidden, w_stack, b_stack, hidden_size):
    h_0, c_0 = hidden
    L, K_pad, fourH = w_stack.shape
    H_pad = fourH // 4
    Din_pad = K_pad - H_pad
    B = x.shape[0]
    H = hidden_size
    B_pad = _round_up(B, 8)

    x_p = pad_x(x, Din_pad, B_pad)
    h0_p, c0_p = pad_state(h_0, c_0, H_pad, B_pad)
    h1_p, c1_p = stacked_lstm_step_padded(x_p, h0_p, c0_p, w_stack, b_stack)

    h_1 = h1_p[:, :B, :H]
    c_1 = c1_p[:, :B, :H]
    return h_1[-1], (h_1, c_1)


# ----------------------------------------------------------------------------
# Pure-JAX reference (nn.LSTMCell semantics) for correctness check.
# ----------------------------------------------------------------------------
def stacked_lstm_reference(x, hidden, params):
    h_0, c_0 = hidden
    inp = x
    h_1, c_1 = [], []
    for i, (w_ih, w_hh, b_ih, b_hh) in enumerate(params):
        H = w_hh.shape[1]
        gates = inp @ w_ih.T + b_ih + h_0[i] @ w_hh.T + b_hh
        i_g = jax.nn.sigmoid(gates[:, 0 * H:1 * H])
        f_g = jax.nn.sigmoid(gates[:, 1 * H:2 * H])
        g_g = jnp.tanh(gates[:, 2 * H:3 * H])
        o_g = jax.nn.sigmoid(gates[:, 3 * H:4 * H])
        c_n = f_g * c_0[i] + i_g * g_g
        h_n = o_g * jnp.tanh(c_n)
        inp = h_n
        h_1.append(h_n)
        c_1.append(c_n)
    return inp, (jnp.stack(h_1), jnp.stack(c_1))


# ----------------------------------------------------------------------------
# Deterministic parameter init (same shapes / init range as nn.LSTMCell).
# ----------------------------------------------------------------------------
def init_params(key, num_layers, input_size, hidden_size, dtype=jnp.float32):
    params = []
    d_in = input_size
    bound = 1.0 / jnp.sqrt(jnp.asarray(hidden_size, jnp.float32))
    for _ in range(num_layers):
        key, k1, k2, k3, k4 = jax.random.split(key, 5)
        w_ih = jax.random.uniform(k1, (4 * hidden_size, d_in), dtype,
                                  minval=-bound, maxval=bound)
        w_hh = jax.random.uniform(k2, (4 * hidden_size, hidden_size), dtype,
                                  minval=-bound, maxval=bound)
        b_ih = jax.random.uniform(k3, (4 * hidden_size,), dtype,
                                  minval=-bound, maxval=bound)
        b_hh = jax.random.uniform(k4, (4 * hidden_size,), dtype,
                                  minval=-bound, maxval=bound)
        params.append((w_ih, w_hh, b_ih, b_hh))
        d_in = hidden_size
    return params


if __name__ == "__main__":
    num_layers = 2
    batch = 2            # TODO(synk): real win is batching beams/sequences toward MXU rows
    input_size = 32
    hidden_size = 32
    dropout = 0.1        # inference -> identity

    key = jax.random.PRNGKey(0)
    key, kx, kh, kc = jax.random.split(key, 4)

    x = jax.random.normal(kx, (batch, input_size), jnp.float32)
    h_0 = jax.random.normal(kh, (num_layers, batch, hidden_size), jnp.float32)
    c_0 = jax.random.normal(kc, (num_layers, batch, hidden_size), jnp.float32)

    params = init_params(key, num_layers, input_size, hidden_size)

    # Pure-JAX reference of the PyTorch semantics.
    out_r, (h_r, c_r) = stacked_lstm_reference(x, (h_0, c_0), params)

    # ---- f32-weight path: bit-faithful correctness check --------------------
    w_f32, b_f32 = prepare_params(params, input_size, hidden_size,
                                  dtype=jnp.float32)
    out, (h_1, c_1) = stacked_lstm_forward(x, (h_0, c_0), w_f32, b_f32,
                                           hidden_size)
    jax.block_until_ready((out, h_1, c_1))
    assert out.shape == (batch, hidden_size)
    assert h_1.shape == (num_layers, batch, hidden_size)
    assert c_1.shape == (num_layers, batch, hidden_size)
    assert jnp.allclose(out, out_r, rtol=2e-5, atol=2e-5)
    assert jnp.allclose(h_1, h_r, rtol=2e-5, atol=2e-5)
    assert jnp.allclose(c_1, c_r, rtol=2e-5, atol=2e-5)

    # ---- bf16-weight hot path (default): halves the dominant HBM W stream ---
    w_bf16, b_bf16 = prepare_params(params, input_size, hidden_size)
    out_b, (h_b, c_b) = stacked_lstm_forward(x, (h_0, c_0), w_bf16, b_bf16,
                                             hidden_size)
    jax.block_until_ready((out_b, h_b, c_b))
    assert jnp.allclose(out_b, out_r, rtol=5e-2, atol=5e-2)
    assert jnp.allclose(h_b, h_r, rtol=5e-2, atol=5e-2)
    assert jnp.allclose(c_b, c_r, rtol=5e-2, atol=5e-2)

    # ---- persistent padded state + in-place aliasing: decode-loop hot path --
    H_pad = w_bf16.shape[2] // 4
    Din_pad = w_bf16.shape[1] - H_pad
    B_pad = _round_up(batch, 8)
    x_p = pad_x(x, Din_pad, B_pad)
    h_p, c_p = pad_state(h_0, c_0, H_pad, B_pad)

    @functools.partial(jax.jit, donate_argnums=(1, 2))
    def decode_step(x_p, h_p, c_p):
        return stacked_lstm_step_padded(x_p, h_p, c_p, w_bf16, b_bf16)

    for _ in range(3):
        h_p, c_p = decode_step(x_p, h_p, c_p)
    jax.block_until_ready((h_p, c_p))
    assert h_p.shape == (num_layers, B_pad, H_pad)

    print("KERNEL_OK")
</pallas_src>

<mosaic_0001>
module attributes {stable_mosaic.version = 11 : i64} {
  func.func @_stacked_lstm_kernel(%arg0: i32, %arg1: memref<8x128xf32, #tpu.memory_space<vmem>>, %arg2: memref<1x8x128xf32, #tpu.memory_space<vmem>>, %arg3: memref<1x8x128xf32, #tpu.memory_space<vmem>>, %arg4: memref<1x256x512xf32, #tpu.memory_space<vmem>>, %arg5: memref<1x1x512xf32, #tpu.memory_space<vmem>>, %arg6: memref<1x8x128xf32, #tpu.memory_space<vmem>>, %arg7: memref<1x8x128xf32, #tpu.memory_space<vmem>>, %arg8: memref<8x256xf32, #tpu.memory_space<vmem>>) attributes {dimension_semantics = [#tpu.dimension_semantics<arbitrary>], iteration_bounds = array<i64: 2>, scalar_prefetch = 0 : i64, scratch_operands = 1 : i64, tpu.core_type = #tpu.core_type<tc>, window_params = [{pipeline_mode = #tpu.pipeline_mode<synchronous>, transform_indices = @transform_0, window_bounds = array<i64: 8, 128>}, {transform_indices = @transform_1, window_bounds = array<i64: 1, 8, 128>}, {transform_indices = @transform_2, window_bounds = array<i64: 1, 8, 128>}, {transform_indices = @transform_3, window_bounds = array<i64: 1, 256, 512>}, {transform_indices = @transform_4, window_bounds = array<i64: 1, 1, 512>}, {transform_indices = @transform_5, window_bounds = array<i64: 1, 8, 128>}, {transform_indices = @transform_6, window_bounds = array<i64: 1, 8, 128>}]} {
    %c0_i32 = arith.constant 0 : i32
    %0 = arith.cmpi eq, %arg0, %c0_i32 : i32
    %1 = arith.extui %0 : i1 to i32
    %c0_i32_0 = arith.constant 0 : i32
    %2 = arith.cmpi ne, %1, %c0_i32_0 : i32
    scf.if %2 {
      %c0_25 = arith.constant 0 : index
      %c0_26 = arith.constant 0 : index
      %51 = vector.load %arg1[%c0_25, %c0_26] : memref<8x128xf32, #tpu.memory_space<vmem>>, vector<8x128xf32>
      %c0_27 = arith.constant 0 : index
      %c0_28 = arith.constant 0 : index
      %52 = vector.load %arg8[%c0_27, %c0_28] : memref<8x256xf32, #tpu.memory_space<vmem>>, vector<8x128xf32>
      tpu.vector_store %arg8[%c0_27, %c0_28], %51 {strides = array<i32>} : memref<8x256xf32, #tpu.memory_space<vmem>>, vector<8x128xf32>,
    } else {
    }
    %c0 = arith.constant 0 : index
    %c0_1 = arith.constant 0 : index
    %c0_2 = arith.constant 0 : index
    %3 = vector.load %arg2[%c0, %c0_1, %c0_2] : memref<1x8x128xf32, #tpu.memory_space<vmem>>, vector<1x8x128xf32>
    %4 = vector.shape_cast %3 : vector<1x8x128xf32> to vector<8x128xf32>
    %c0_3 = arith.constant 0 : index
    %c128 = arith.constant 128 : index
    %5 = vector.load %arg8[%c0_3, %c128] : memref<8x256xf32, #tpu.memory_space<vmem>>, vector<8x128xf32>
    tpu.vector_store %arg8[%c0_3, %c128], %4 {strides = array<i32>} : memref<8x256xf32, #tpu.memory_space<vmem>>, vector<8x128xf32>,
    %c0_4 = arith.constant 0 : index
    %c0_5 = arith.constant 0 : index
    %c0_6 = arith.constant 0 : index
    %6 = vector.load %arg3[%c0_4, %c0_5, %c0_6] : memref<1x8x128xf32, #tpu.memory_space<vmem>>, vector<1x8x128xf32>
    %7 = vector.shape_cast %6 : vector<1x8x128xf32> to vector<8x128xf32>
    %c0_7 = arith.constant 0 : index
    %c0_8 = arith.constant 0 : index
    %8 = vector.load %arg8[%c0_7, %c0_8] : memref<8x256xf32, #tpu.memory_space<vmem>>, vector<8x256xf32>
    %c0_9 = arith.constant 0 : index
    %c0_10 = arith.constant 0 : index
    %c0_11 = arith.constant 0 : index
    %9 = vector.load %arg4[%c0_9, %c0_10, %c0_11] : memref<1x256x512xf32, #tpu.memory_space<vmem>>, vector<1x256x512xf32>
    %10 = vector.shape_cast %9 : vector<1x256x512xf32> to vector<256x512xf32>
    %cst = arith.constant dense<0.000000e+00> : vector<8x512xf32>
    %11 = tpu.matmul %8, %10, %cst {dimension_numbers = #tpu.dot_dimension_numbers<[1], [0], [0], [1], [0, 0, 1, 1], [], []>} : vector<8x256xf32>, vector<256x512xf32>, vector<8x512xf32> -> vector<8x512xf32>
    %c0_12 = arith.constant 0 : index
    %c0_13 = arith.constant 0 : index
    %c0_14 = arith.constant 0 : index
    %12 = vector.load %arg5[%c0_12, %c0_13, %c0_14] : memref<1x1x512xf32, #tpu.memory_space<vmem>>, vector<1x1x512xf32>
    %13 = vector.shape_cast %12 : vector<1x1x512xf32> to vector<1x512xf32>
    %14 = vector.broadcast %13 : vector<1x512xf32> to vector<8x512xf32>
    %15 = arith.addf %11, %14 : vector<8x512xf32>
    %16 = vector.extract_strided_slice %15 {offsets = [0, 0], sizes = [8, 128], strides = [1, 1]} : vector<8x512xf32> to vector<8x128xf32>
    %17 = arith.negf %16 : vector<8x128xf32>
    %18 = math.exp %17 : vector<8x128xf32>
    %cst_15 = arith.constant 1.000000e+00 : f32
    %19 = vector.broadcast %cst_15 : f32 to vector<8x128xf32>
    %20 = arith.addf %19, %18 : vector<8x128xf32>
    %21 = arith.divf %19, %20 : vector<8x128xf32>
    %22 = vector.extract_strided_slice %15 {offsets = [0, 128], sizes = [8, 128], strides = [1, 1]} : vector<8x512xf32> to vector<8x128xf32>
    %23 = arith.negf %22 : vector<8x128xf32>
    %24 = math.exp %23 : vector<8x128xf32>
    %cst_16 = arith.constant 1.000000e+00 : f32
    %25 = vector.broadcast %cst_16 : f32 to vector<8x128xf32>
    %26 = arith.addf %25, %24 : vector<8x128xf32>
    %27 = arith.divf %25, %26 : vector<8x128xf32>
    %28 = vector.extract_strided_slice %15 {offsets = [0, 256], sizes = [8, 128], strides = [1, 1]} : vector<8x512xf32> to vector<8x128xf32>
    %29 = math.tanh %28 : vector<8x128xf32>
    %30 = vector.extract_strided_slice %15 {offsets = [0, 384], sizes = [8, 128], strides = [1, 1]} : vector<8x512xf32> to vector<8x128xf32>
    %31 = arith.negf %30 : vector<8x128xf32>
    %32 = math.exp %31 : vector<8x128xf32>
    %cst_17 = arith.constant 1.000000e+00 : f32
    %33 = vector.broadcast %cst_17 : f32 to vector<8x128xf32>
    %34 = arith.addf %33, %32 : vector<8x128xf32>
    %35 = arith.divf %33, %34 : vector<8x128xf32>
    %36 = arith.mulf %27, %7 : vector<8x128xf32>
    %37 = arith.mulf %21, %29 : vector<8x128xf32>
    %38 = arith.addf %36, %37 : vector<8x128xf32>
    %39 = math.tanh %38 : vector<8x128xf32>
    %40 = arith.mulf %35, %39 : vector<8x128xf32>
    %c0_18 = arith.constant 0 : index
    %c0_19 = arith.constant 0 : index
    %c0_20 = arith.constant 0 : index
    %41 = vector.load %arg6[%c0_18, %c0_19, %c0_20] : memref<1x8x128xf32, #tpu.memory_space<vmem>>, vector<1x8x128xf32>
    %42 = vector.shape_cast %41 : vector<1x8x128xf32> to vector<8x128xf32>
    %43 = vector.shape_cast %40 : vector<8x128xf32> to vector<1x8x128xf32>
    tpu.vector_store %arg6[%c0_18, %c0_19, %c0_20], %43 {strides = array<i32>} : memref<1x8x128xf32, #tpu.memory_space<vmem>>, vector<1x8x128xf32>,
    %c0_21 = arith.constant 0 : index
    %c0_22 = arith.constant 0 : index
    %c0_23 = arith.constant 0 : index
    %44 = vector.load %arg7[%c0_21, %c0_22, %c0_23] : memref<1x8x128xf32, #tpu.memory_space<vmem>>, vector<1x8x128xf32>
    %45 = vector.shape_cast %44 : vector<1x8x128xf32> to vector<8x128xf32>
    %46 = vector.shape_cast %38 : vector<8x128xf32> to vector<1x8x128xf32>
    tpu.vector_store %arg7[%c0_21, %c0_22, %c0_23], %46 {strides = array<i32>} : memref<1x8x128xf32, #tpu.memory_space<vmem>>, vector<1x8x128xf32>,
    %c1_i32 = arith.constant 1 : i32
    %47 = arith.addi %arg0, %c1_i32 : i32
    %c2_i32 = arith.constant 2 : i32
    %48 = arith.cmpi slt, %47, %c2_i32 : i32
    %49 = arith.extui %48 : i1 to i32
    %c0_i32_24 = arith.constant 0 : i32
    %50 = arith.cmpi ne, %49, %c0_i32_24 : i32
    scf.if %50 {
      %c0_25 = arith.constant 0 : index
      %c0_26 = arith.constant 0 : index
      %51 = vector.load %arg8[%c0_25, %c0_26] : memref<8x256xf32, #tpu.memory_space<vmem>>, vector<8x128xf32>
      tpu.vector_store %arg8[%c0_25, %c0_26], %40 {strides = array<i32>} : memref<8x256xf32, #tpu.memory_space<vmem>>, vector<8x128xf32>,
    } else {
    }
    return
  }
  func.func @transform_0(%arg0: i32) -> (i32, i32) {
    %c0_i32 = arith.constant 0 : i32
    %c0_i32_0 = arith.constant 0 : i32
    %c0_i32_1 = arith.constant 0 : i32
    return %c0_i32, %c0_i32_0 : i32, i32
  }
  func.func @transform_1(%arg0: i32) -> (i32, i32, i32) {
    %c0_i32 = arith.constant 0 : i32
    %c0_i32_0 = arith.constant 0 : i32
    %c0_i32_1 = arith.constant 0 : i32
    return %arg0, %c0_i32, %c0_i32_0 : i32, i32, i32
  }
  func.func @transform_2(%arg0: i32) -> (i32, i32, i32) {
    %c0_i32 = arith.constant 0 : i32
    %c0_i32_0 = arith.constant 0 : i32
    %c0_i32_1 = arith.constant 0 : i32
    return %arg0, %c0_i32, %c0_i32_0 : i32, i32, i32
  }
  func.func @transform_3(%arg0: i32) -> (i32, i32, i32) {
    %c0_i32 = arith.constant 0 : i32
    %c0_i32_0 = arith.constant 0 : i32
    %c0_i32_1 = arith.constant 0 : i32
    return %arg0, %c0_i32, %c0_i32_0 : i32, i32, i32
  }
  func.func @transform_4(%arg0: i32) -> (i32, i32, i32) {
    %c0_i32 = arith.constant 0 : i32
    %c0_i32_0 = arith.constant 0 : i32
    %c0_i32_1 = arith.constant 0 : i32
    return %arg0, %c0_i32, %c0_i32_0 : i32, i32, i32
  }
  func.func @transform_5(%arg0: i32) -> (i32, i32, i32) {
    %c0_i32 = arith.constant 0 : i32
    %c0_i32_0 = arith.constant 0 : i32
    %c0_i32_1 = arith.constant 0 : i32
    return %arg0, %c0_i32, %c0_i32_0 : i32, i32, i32
  }
  func.func @transform_6(%arg0: i32) -> (i32, i32, i32) {
    %c0_i32 = arith.constant 0 : i32
    %c0_i32_0 = arith.constant 0 : i32
    %c0_i32_1 = arith.constant 0 : i32
    return %arg0, %c0_i32, %c0_i32_0 : i32, i32, i32
  }
}

</mosaic_0001>

<bundles_post_ra>
// kernel: tpu_custom_call.1
= control target key start
LH: loop header
LB: loop body
LE: loop exit
PB: predicated region body
PF: predicated region fallthrough
CT: control target
= control target key end

     0   :  { %s1626_s0 = inlined_call_operand.vmem [shape: f32[8,128], index: 0, kind: input, shape index: {}]   ;;  %s1627_s1 = inlined_call_operand.hbm [shape: f32[2,8,128], index: 1, kind: input, shape index: {}, may-alias: {1,5}]   ;;  %s1628_s2 = inlined_call_operand.hbm [shape: f32[2,8,128], index: 2, kind: input, shape index: {}, may-alias: {2,6}]   ;;  %s1629_s3 = inlined_call_operand.hbm [shape: f32[2,256,512], index: 3, kind: input, shape index: {}]   ;;  %s1630_s4 = inlined_call_operand.vmem [shape: f32[2,1,512], index: 4, kind: input, shape index: {}]   ;;  %s1631_s5 = inlined_call_operand.hbm [shape: f32[2,8,128], index: 5, kind: output, shape index: {0}, may-alias: {1,5}]   ;;  %s1632_s6 = inlined_call_operand.hbm [shape: f32[2,8,128], index: 6, kind: output, shape index: {1}, may-alias: {2,6}]  }
   0x1   :  { %1641 = sst [smem:[#allocation20_spill]] %s1628_s2 }
   0x2   :  { %12 = vsyncpa [#allocation4], 0 }
   0x3   :  { %14 = vsyncpa [#allocation4 + $0x1], 0 }
   0x4   :  { %15 = vsyncpa [#allocation7], 0 }
   0x5   :  { %17 = vsyncpa [#allocation7 + $0x1], 0 }
   0x6   :  { %18 = vsyncpa [#allocation5], 0 }
   0x7   :  { %20 = vsyncpa [#allocation5 + $0x1], 0 }
   0x8   :  { %21 = vsyncpa [#allocation11], 0 }
   0x9   :  { %23 = vsyncpa [#allocation11 + $0x1], 0  ;;  %s1227_s21 = smov 0   ;;  %s1229_s22 = smov 0  }
   0xa   :  { %s1231_s23 = smov 0   ;;  %s1233_s24 = smov 0  }
   0xb LB: > { %1642 = sst [smem:[#allocation16_spill]] %s1179_s23  ;;  %s1248_s25 = sadd.s32 4294967295, %s1183_s24   ;;  %s1183_s24 = sphi %s1233_s24, %s1661_s24   ;;  %s1179_s23 = sphi %s1231_s23, %s1663_s23   ;;  %s1175_s22 = sphi %s1229_s22, %s1665_s22   ;;  %s1171_s21 = sphi %s1227_s21, %s1664_s21  }
   0xc   : > { %1643 = sst [smem:[#allocation17_spill]] %s1183_s24  ;;  %s893_s26 = sadd.s32 4294967294, %s1183_s24  }
   0xd   : > { %s1252_s27 = sadd.s32 1, %s1183_s24   ;;  %s57_s28 = sadd.s32 1, %s1179_s23 }
   0xe   : > { %1644 = sst [smem:[#allocation18_spill]] %s1252_s27  ;;  %s54_s29 = ssub.s32 %s1183_s24, %s1252_s27 }
   0xf   : > { %p64_p0 = scmp.ne.s32.totalorder %s1179_s23, %s1175_s22  ;;  %p55_p1 = scmp.eq.s32.totalorder %s54_s29, 0 }
  0x10   : > { %p65_p2 = scmp.eq.s32.totalorder %s1183_s24, 0  ;;  %p70_p3 = scmp.ne.s32.totalorder %s1175_s22, %s1171_s21 }
  0x11   : > { %p71_p4 = scmp.eq.s32.totalorder %s1248_s25, 0  ;;  %p172_p7 = scmp.eq.s32.totalorder %s1248_s25, 1 }
  0x12   : > { %s1264_s30 = scalar_select %p55_p1, %s1179_s23, %s57_s28  }
  0x13   : > { %p66_p5 = por %p65_p2, %p64_p0  ;;  %p1266_p6 = por %p71_p4, %p70_p3 }
  0x14   : > { %1645 = sst [smem:[#allocation19_spill]] %s1264_s30  ;;  %p178_p8 = scmp.eq.s32.totalorder %s893_s26, 1 }
  0x15   : > { %s1646_s7 = scalar_select %p1266_p6, 1, 0 }
  0x16   : > { %p949_p10 = scmp.lt.s32.totalorder %s1183_s24, 2  ;;  %p1273_p11 = por %p172_p7, %p64_p0 }
  0x17   : > { %p1277_p12 = por %p178_p8, %p70_p3  ;;  %s1282_s10 = sand.u32 1, %s1179_s23  }
  0x18   : > { %s1647_s8 = scalar_select %p1273_p11, 1, 0 }
  0x19   : > { %s1648_s9 = scalar_select %p1277_p12, 1, 0 }
  0x1a   : > { %s1634_s11 = sshll.u32 %s1183_s24, 7  ;;  %s1633_s12 = sshll.u32 %s1282_s10, 3 }
  0x1b   : > { %p1286_p13 = pnand %p949_p10, %p66_p5  ;;  %s245_s14 = sand.u32 1, %s1183_s24  }
  0x1c   : > { %s1650_s2 = sld [smem:[#allocation20_spill]]  ;;  %s249_s18 = scalar_lea.vmem [#allocation6], %s1633_s12 }
  0x1d   : > { %s256_s19 = sshll.u32 %s249_s18, 4  ;;  %s900_s20 = sshll.u32 %s1282_s10, 10  ;;  %s257_s19 = int_to_ptr.vmem [resolvable:$true] %s256_s19 }
  0x1e   : > { %s1301_s26 = scalar_lea.sflag [#allocation7], %s245_s14  ;;  %p1307_p1 = pneg %p1286_p13 }
  0x22   : > { %s1296_s17 = scalar_lea.hbm %s1650_s2, %s1634_s11  ;;  %s1006_s12 = scalar_lea.hbm %s1650_s2, 256 }
  0x23   : > { %s1001_s28 = scalar_lea.hbm %s1296_s17, 128  ;;  %p1007_p4 = scmp.lt.s32.totalorder %s1296_s17, %s1650_s2 }
  0x24   : > { %p1002_p0 = scmp.ne.s32.totalorder %s1296_s17, %s1001_s28  ;;  %p1008_p5 = scmp.lt.s32.totalorder %s1006_s12, %s1001_s28 }
  0x26   : > { %p1004_p2 = pnand %p1307_p1, %p1002_p0  ;;  %p1009_p7 = por %p1008_p5, %p1007_p4 }
  0x28   : > { %p1005_p3 = pneg %p1004_p2 }
  0x2a   : > { %p1010_p8 = pnand %p1009_p7, %p1005_p3 }
  0x2c   : > { %1013 = shalt.err (!%p1010_p8)
}
  0x2d   : > { %s1014_s14 = scalar_lea.vmem %s257_s19, 128  ;;  %s1185_s30 = smov [#allocation6]  }
  0x2e   : > { %p1015_p10 = scmp.ne.s32.totalorder %s257_s19, %s1014_s14  ;;  %s1019_s23 = sshll.u32 %s1185_s30, 4  ;;  %s1020_s23 = int_to_ptr.vmem [resolvable:$false] %s1019_s23 }
  0x2f   : > { %s1021_s27 = scalar_lea.vmem %s1020_s23, 256  ;;  %p1022_p0 = scmp.lt.s32.totalorder %s257_s19, %s1020_s23 }
  0x30   : > { %p1017_p9 = pnand %p1015_p10, %p1307_p1  ;;  %p1023_p2 = scmp.lt.s32.totalorder %s1021_s27, %s1014_s14 }
  0x32   : > { %p1018_p12 = pneg %p1017_p9  ;;  %p1024_p11 = por %p1023_p2, %p1022_p0 }
  0x34   : > { %p1025_p6 = pnand %p1024_p11, %p1018_p12 }
  0x36   : > { %1028 = shalt.err (!%p1025_p6)
}
  0x37   : > { %938 = dma.hbm_to_vmem [thread:$0]  (!%p1286_p13), %s1296_s17, 128, %s257_s19, %s1301_s26  }
  0x38   : > { %p903_p9 = scmp.ge.s32.totalorder %s1183_s24, 1  ;;  %s267_s30 = scalar_lea.vmem [#allocation8], %s900_s20 }
  0x39   : > { %s274_s11 = sshll.u32 %s267_s30, 4  ;;  %p289_p3 = scmp.lt.s32.totalorder %s1183_s24, 3  ;;  %s1328_s11 = int_to_ptr.vmem [resolvable:$true] %s274_s11 }
  0x3a   : > { %s1653_s27 = sshll.u32 %s1183_s24, 7  ;;  %s1654_s16 = sshll.u32 %s1282_s10, 3 }
  0x3b   : > { %p1330_p11 = pnand %p903_p9, %p289_p3  ;;  %s1339_s15 = scalar_lea.hbm %s1627_s1, %s1653_s27 }
  0x3c   : > { %s231_s17 = scalar_lea.vmem [#allocation3], %s1654_s16  ;;  %s921_s20 = sshll.u32 %s1183_s24, 14 }
  0x3d   : > { %s1652_s23 = scalar_select %p1330_p11, 1, 0 }
  0x3e   : > { %s238_s19 = sshll.u32 %s231_s17, 4  ;;  %s228_s18 = scalar_lea.sflag [#allocation4], %s1282_s10  ;;  %s239_s19 = int_to_ptr.vmem [resolvable:$true] %s238_s19 }
  0x3f   : > { %s1029_s14 = scalar_lea.hbm %s1339_s15, 128  ;;  %s1034_s12 = scalar_lea.hbm %s1627_s1, 256 }
  0x40   : > { %p1030_p6 = scmp.ne.s32.totalorder %s1339_s15, %s1029_s14  ;;  %p1035_p5 = scmp.lt.s32.totalorder %s1339_s15, %s1627_s1 }
  0x41   : > { %p1036_p7 = scmp.lt.s32.totalorder %s1034_s12, %s1029_s14 }
  0x42   : > { %p1032_p12 = pnand %p1030_p6, %p1307_p1 }
  0x43   : > { %p1037_p8 = por %p1036_p7, %p1035_p5 }
  0x44   : > { %p1033_p4 = pneg %p1032_p12 }
  0x46   : > { %p1038_p10 = pnand %p1037_p8, %p1033_p4 }
  0x48   : > { %1041 = shalt.err (!%p1038_p10)
}
  0x49   : > { %s1042_s16 = scalar_lea.vmem %s239_s19, 128  ;;  %s1186_s10 = smov [#allocation3]  }
  0x4a   : > { %p1043_p0 = scmp.ne.s32.totalorder %s239_s19, %s1042_s16  ;;  %s1047_s17 = sshll.u32 %s1186_s10, 4  ;;  %s1048_s17 = int_to_ptr.vmem [resolvable:$false] %s1047_s17 }
  0x4b   : > { %s1049_s24 = scalar_lea.vmem %s1048_s17, 256  ;;  %p1050_p3 = scmp.lt.s32.totalorder %s239_s19, %s1048_s17 }
  0x4c   : > { %p1045_p2 = pnand %p1043_p0, %p1307_p1  ;;  %p1051_p6 = scmp.lt.s32.totalorder %s1049_s24, %s1042_s16 }
  0x4e   : > { %p1046_p9 = pneg %p1045_p2  ;;  %p1052_p12 = por %p1051_p6, %p1050_p3 }
  0x50   : > { %p1053_p11 = pnand %p1052_p12, %p1046_p9 }
  0x52   : > { %1056 = shalt.err (!%p1053_p11)
}
  0x53   : > { %935 = dma.hbm_to_vmem [thread:$0]  (!%p1286_p13), %s1339_s15, 128, %s239_s19, %s228_s18  }
  0x54   : > { %s1364_s30 = scalar_lea.hbm %s1629_s3, %s921_s20  ;;  %s1062_s28 = scalar_lea.hbm %s1629_s3, 32768 }
  0x55   : > { %s1057_s12 = scalar_lea.hbm %s1364_s30, 16384  ;;  %p1063_p11 = scmp.lt.s32.totalorder %s1364_s30, %s1629_s3 }
  0x56   : > { %p1058_p4 = scmp.ne.s32.totalorder %s1364_s30, %s1057_s12  ;;  %p1064_p8 = scmp.lt.s32.totalorder %s1062_s28, %s1057_s12 }
  0x58   : > { %p1060_p5 = pnand %p1058_p4, %p1307_p1  ;;  %p1065_p10 = por %p1064_p8, %p1063_p11 }
  0x5a   : > { %p1061_p7 = pneg %p1060_p5 }
  0x5c   : > { %p1066_p0 = pnand %p1065_p10, %p1061_p7 }
  0x5e   : > { %1069 = shalt.err (!%p1066_p0)
}
  0x5f   : > { %s1070_s15 = scalar_lea.vmem %s1328_s11, 16384  ;;  %s1187_s19 = smov [#allocation8]  }
  0x60   : > { %p1071_p2 = scmp.ne.s32.totalorder %s1328_s11, %s1070_s15  ;;  %s1075_s20 = sshll.u32 %s1187_s19, 4  ;;  %s1076_s20 = int_to_ptr.vmem [resolvable:$false] %s1075_s20 }
  0x61   : > { %s1077_s18 = scalar_lea.vmem %s1076_s20, 32768  ;;  %p1078_p6 = scmp.lt.s32.totalorder %s1328_s11, %s1076_s20 }
  0x62   : > { %p1073_p9 = pnand %p1071_p2, %p1307_p1  ;;  %p1079_p12 = scmp.lt.s32.totalorder %s1077_s18, %s1070_s15 }
  0x64   : > { %p1074_p3 = pneg %p1073_p9  ;;  %p1080_p4 = por %p1079_p12, %p1078_p6 }
  0x66   : > { %p1081_p5 = pnand %p1080_p4, %p1074_p3 }
  0x68   : > { %1084 = shalt.err (!%p1081_p5)
}
  0x69   : > { %s1188_s17 = smov 512   ;;  %s1189_s2 = smov 32  }
  0x6a   : > { %941 = dma.hbm_to_vmem [thread:$0]  (!%p1286_p13), %s1364_s30, 16384, %s1328_s11, %s1301_s26, %s1188_s17, %s1188_s17, %s1189_s2  }
  0x6b   : > { %p1655_p1 = scmp.ne.s32.totalorder %s1652_s23, 0 }
  0x6c   : > { %s1390_s29 = sand.u32 (!%p1655_p1), 1, %s1175_s22   ;;  %p1656_p7 = scmp.ne.s32.totalorder (!%p1655_p1), %s1646_s7, 0 }
  0x6d   : > { %293 = sbr.rel (%p1655_p1) target bundleno = 493 (0x1ed), region = 40  ;;  %s1393_s14 = sshll.u32 (!%p1655_p1), %s1390_s29, 3 }
  0x6e   : > { %s296_s12 = scalar_lea.sflag (!%p1655_p1), [#allocation4], %s1390_s29  ;;  %s299_s24 = scalar_lea.vmem (!%p1655_p1), [#allocation3], %s1393_s14 }
  0x72   : > { %1154 = dma.done.wait (%p1656_p7), %s296_s12, 128  }
  0x73   : > { %1156 = vsyncadd (%p1656_p7), %s296_s12, 4294967168  ;;  %s304_s13 = sand.u32 1, %s1248_s25   ;;  %s308_s11 = scalar_lea.vmem [#allocation6], %s1393_s14 }
  0x74   : > { %s305_s26 = scalar_lea.sflag [#allocation7], %s304_s13 }
  0x75   : > { %1158 = dma.done.wait (%p1656_p7), %s305_s26, 16512  }
  0x76   : > { %1160 = vsyncadd (%p1656_p7), %s305_s26, 4294950784  ;;  %s906_s23 = sshll.u32 %s1390_s29, 10  ;;  %p365_p13 = scmp.lt.s32.totalorder %s1248_s25, 1 }
  0x77   : > { %s1415_s15 = scalar_lea.vmem [#allocation8], %s906_s23  ;;  %s357_s19 = scalar_lea.vmem [#allocation9], %s1393_s14 }
  0x78   : > { %s366_s30 = scalar_select %p365_p13, %s1248_s25, 1 }
  0x79   : > { %s364_s20 = scalar_lea.vmem [#allocation10], %s1393_s14  ;;  %p910_p11 = scmp.ne.s32.totalorder %s1248_s25, 0 }
  0x7a   : > { %s909_s27 = sshll.u32 %s366_s30, 2 }
  0x7b   : > { %s1413_s10 = scalar_lea.vmem %s1630_s4, %s909_s27  ;;  %372 = sbr.rel (%p910_p11) target bundleno = 130 (0x82), region = 56 }
  0x80   : > { %v373_v0 = vld [vmem:[%s1626_s0] sm:$0xff] }
  0x81   : > { %374 = vst [vmem:[#allocation2] sm:$0xff] %v373_v0 }
  0x82 PF: > { %v441_v1 = vld [vmem:[%s1415_s15 + $0x1e8] sm:$0xff]  ;;  %v440_v2 = vld [vmem:[%s1415_s15 + $0x1e0] sm:$0xff]  ;;  %v443_v9 = vld [vmem:[%s1415_s15 + $0x1f8] sm:$0xff]  ;;  %s698_s17 = sadd.s32 1, %s1248_s25 }
  0x83   : > { %v437_v3 = vld [vmem:[%s1415_s15 + $0x1c8] sm:$0xff]  ;;  %530 = vmatprep.subr.mxu0 %v441_v1  ;;  %v436_v4 = vld [vmem:[%s1415_s15 + $0x1c0] sm:$0xff]  ;;  %601 = vmatprep.subr.mxu1 %v443_v9  ;;  %v442_v11 = vld [vmem:[%s1415_s15 + $0x1f0] sm:$0xff]  ;;  %p914_p8 = scmp.ge.s32.totalorder %s698_s17, 2 }
  0x84   : > { %531 = vmatpush1.msra.mxu0 %v440_v2  ;;  %v433_v5 = vld [vmem:[%s1415_s15 + $0x1a8] sm:$0xff]  ;;  %v432_v6 = vld [vmem:[%s1415_s15 + $0x1a0] sm:$0xff]  ;;  %602 = vmatpush1.msra.mxu1 %v442_v11  ;;  %v439_v13 = vld [vmem:[%s1415_s15 + $0x1d8] sm:$0xff] }
  0x85   : > { %532 = vmatprep.subr.mxu0 %v437_v3  ;;  %v429_v7 = vld [vmem:[%s1415_s15 + $0x188] sm:$0xff]  ;;  %v428_v8 = vld [vmem:[%s1415_s15 + $0x180] sm:$0xff]  ;;  %v438_v14 = vld [vmem:[%s1415_s15 + $0x1d0] sm:$0xff]  ;;  %603 = vmatprep.subr.mxu1 %v439_v13 }
  0x86   : > { %533 = vmatpush1.msra.mxu0 %v436_v4  ;;  %v425_v10 = vld [vmem:[%s1415_s15 + $0x168] sm:$0xff]  ;;  %v424_v12 = vld [vmem:[%s1415_s15 + $0x160] sm:$0xff]  ;;  %v435_v16 = vld [vmem:[%s1415_s15 + $0x1b8] sm:$0xff]  ;;  %604 = vmatpush1.msra.mxu1 %v438_v14 }
  0x87   : > { %534 = vmatprep.subr.mxu0 %v433_v5  ;;  %v421_v15 = vld [vmem:[%s1415_s15 + $0x148] sm:$0xff]  ;;  %v420_v17 = vld [vmem:[%s1415_s15 + $0x140] sm:$0xff]  ;;  %v434_v18 = vld [vmem:[%s1415_s15 + $0x1b0] sm:$0xff]  ;;  %605 = vmatprep.subr.mxu1 %v435_v16 }
  0x88   : > { %535 = vmatpush1.msra.mxu0 %v432_v6  ;;  %v431_v19 = vld [vmem:[%s1415_s15 + $0x198] sm:$0xff]  ;;  %v417_v20 = vld [vmem:[%s1415_s15 + $0x128] sm:$0xff]  ;;  %v430_v21 = vld [vmem:[%s1415_s15 + $0x190] sm:$0xff]  ;;  %606 = vmatpush1.msra.mxu1 %v434_v18 }
  0x89   : > { %536 = vmatprep.subr.mxu0 %v429_v7  ;;  %v416_v22 = vld [vmem:[%s1415_s15 + $0x120] sm:$0xff]  ;;  %v427_v23 = vld [vmem:[%s1415_s15 + $0x178] sm:$0xff]  ;;  %v413_v24 = vld [vmem:[%s1415_s15 + $0x108] sm:$0xff]  ;;  %607 = vmatprep.subr.mxu1 %v431_v19 }
  0x8a   : > { %537 = vmatpush1.msra.mxu0 %v428_v8  ;;  %v426_v25 = vld [vmem:[%s1415_s15 + $0x170] sm:$0xff]  ;;  %v412_v26 = vld [vmem:[%s1415_s15 + $0x100] sm:$0xff]  ;;  %608 = vmatpush1.msra.mxu1 %v430_v21  ;;  %v423_v27 = vld [vmem:[%s1415_s15 + $0x158] sm:$0xff] }
  0x8b   : > { %538 = vmatprep.subr.mxu0 %v425_v10  ;;  %v409_v28 = vld [vmem:[%s1415_s15 + $0xe8] sm:$0xff]  ;;  %609 = vmatprep.subr.mxu1 %v427_v23  ;;  %v422_v29 = vld [vmem:[%s1415_s15 + $0x150] sm:$0xff]  ;;  %v408_v30 = vld [vmem:[%s1415_s15 + $0xe0] sm:$0xff] }
  0x8c   : > { %539 = vmatpush1.msra.mxu0 %v424_v12  ;;  %610 = vmatpush1.msra.mxu1 %v426_v25  ;;  %v419_v31 = vld [vmem:[%s1415_s15 + $0x138] sm:$0xff]  ;;  %v405_v32 = vld [vmem:[%s1415_s15 + $0xc8] sm:$0xff]  ;;  %v418_v33 = vld [vmem:[%s1415_s15 + $0x130] sm:$0xff] }
  0x8d   : > { %540 = vmatprep.subr.mxu0 %v421_v15  ;;  %611 = vmatprep.subr.mxu1 %v423_v27  ;;  %v404_v34 = vld [vmem:[%s1415_s15 + $0xc0] sm:$0xff]  ;;  %v415_v35 = vld [vmem:[%s1415_s15 + $0x118] sm:$0xff]  ;;  %v401_v36 = vld [vmem:[%s1415_s15 + $0xa8] sm:$0xff] }
  0x8e   : > { %541 = vmatpush1.msra.mxu0 %v420_v17  ;;  %612 = vmatpush1.msra.mxu1 %v422_v29  ;;  %v414_v37 = vld [vmem:[%s1415_s15 + $0x110] sm:$0xff]  ;;  %v400_v38 = vld [vmem:[%s1415_s15 + $0xa0] sm:$0xff]  ;;  %v411_v39 = vld [vmem:[%s1415_s15 + $0xf8] sm:$0xff] }
  0x8f   : > { %542 = vmatprep.subr.mxu0 %v417_v20  ;;  %613 = vmatprep.subr.mxu1 %v419_v31  ;;  %v397_v40 = vld [vmem:[%s1415_s15 + $0x88] sm:$0xff]  ;;  %v410_v41 = vld [vmem:[%s1415_s15 + $0xf0] sm:$0xff]  ;;  %v396_v42 = vld [vmem:[%s1415_s15 + $0x80] sm:$0xff] }
  0x90   : > { %543 = vmatpush1.msra.mxu0 %v416_v22  ;;  %614 = vmatpush1.msra.mxu1 %v418_v33  ;;  %v407_v43 = vld [vmem:[%s1415_s15 + $0xd8] sm:$0xff]  ;;  %v393_v44 = vld [vmem:[%s1415_s15 + $0x68] sm:$0xff]  ;;  %v406_v45 = vld [vmem:[%s1415_s15 + $0xd0] sm:$0xff] }
  0x91   : > { %544 = vmatprep.subr.mxu0 %v413_v24  ;;  %615 = vmatprep.subr.mxu1 %v415_v35  ;;  %v392_v46 = vld [vmem:[%s1415_s15 + $0x60] sm:$0xff]  ;;  %v403_v47 = vld [vmem:[%s1415_s15 + $0xb8] sm:$0xff]  ;;  %v389_v48 = vld [vmem:[%s1415_s15 + $0x48] sm:$0xff] }
  0x92   : > { %545 = vmatpush1.msra.mxu0 %v412_v26  ;;  %616 = vmatpush1.msra.mxu1 %v414_v37  ;;  %v402_v49 = vld [vmem:[%s1415_s15 + $0xb0] sm:$0xff]  ;;  %v388_v50 = vld [vmem:[%s1415_s15 + $0x40] sm:$0xff]  ;;  %v399_v51 = vld [vmem:[%s1415_s15 + $0x98] sm:$0xff] }
  0x93   : > { %546 = vmatprep.subr.mxu0 %v409_v28  ;;  %617 = vmatprep.subr.mxu1 %v411_v39  ;;  %v385_v52 = vld [vmem:[%s1415_s15 + $0x28] sm:$0xff]  ;;  %v398_v53 = vld [vmem:[%s1415_s15 + $0x90] sm:$0xff]  ;;  %v384_v54 = vld [vmem:[%s1415_s15 + $0x20] sm:$0xff] }
  0x94   : > { %547 = vmatpush1.msra.mxu0 %v408_v30  ;;  %618 = vmatpush1.msra.mxu1 %v410_v41  ;;  %v395_v55 = vld [vmem:[%s1415_s15 + $0x78] sm:$0xff]  ;;  %v381_v56 = vld [vmem:[%s1415_s15 + $0x8] sm:$0xff]  ;;  %v394_v57 = vld [vmem:[%s1415_s15 + $0x70] sm:$0xff] }
  0x95   : > { %548 = vmatprep.subr.mxu0 %v405_v32  ;;  %619 = vmatprep.subr.mxu1 %v407_v43  ;;  %v380_v58 = vld [vmem:[%s1415_s15] sm:$0xff]  ;;  %v391_v59 = vld [vmem:[%s1415_s15 + $0x58] sm:$0xff]  ;;  %v505_v60 = vld [vmem:[%s1415_s15 + $0x3e8] sm:$0xff] }
  0x96   : > { %549 = vmatpush1.msra.mxu0 %v404_v34  ;;  %620 = vmatpush1.msra.mxu1 %v406_v45  ;;  %v390_v61 = vld [vmem:[%s1415_s15 + $0x50] sm:$0xff]  ;;  %v504_v62 = vld [vmem:[%s1415_s15 + $0x3e0] sm:$0xff]  ;;  %v387_v63 = vld [vmem:[%s1415_s15 + $0x38] sm:$0xff] }
  0x97   : > { %550 = vmatprep.subr.mxu0 %v401_v36  ;;  %621 = vmatprep.subr.mxu1 %v403_v47  ;;  %v501_v0 = vld [vmem:[%s1415_s15 + $0x3c8] sm:$0xff]  ;;  %v386_v1 = vld [vmem:[%s1415_s15 + $0x30] sm:$0xff]  ;;  %v500_v2 = vld [vmem:[%s1415_s15 + $0x3c0] sm:$0xff] }
  0x98   : > { %551 = vmatpush1.msra.mxu0 %v400_v38  ;;  %622 = vmatpush1.msra.mxu1 %v402_v49  ;;  %v383_v3 = vld [vmem:[%s1415_s15 + $0x18] sm:$0xff]  ;;  %v497_v4 = vld [vmem:[%s1415_s15 + $0x3a8] sm:$0xff]  ;;  %v382_v5 = vld [vmem:[%s1415_s15 + $0x10] sm:$0xff] }
  0x99   : > { %552 = vmatprep.subr.mxu0 %v397_v40  ;;  %623 = vmatprep.subr.mxu1 %v399_v51  ;;  %v496_v6 = vld [vmem:[%s1415_s15 + $0x3a0] sm:$0xff]  ;;  %v507_v7 = vld [vmem:[%s1415_s15 + $0x3f8] sm:$0xff]  ;;  %v493_v8 = vld [vmem:[%s1415_s15 + $0x388] sm:$0xff] }
  0x9a   : > { %553 = vmatpush1.msra.mxu0 %v396_v42  ;;  %624 = vmatpush1.msra.mxu1 %v398_v53  ;;  %v506_v9 = vld [vmem:[%s1415_s15 + $0x3f0] sm:$0xff]  ;;  %v492_v10 = vld [vmem:[%s1415_s15 + $0x380] sm:$0xff]  ;;  %v503_v11 = vld [vmem:[%s1415_s15 + $0x3d8] sm:$0xff] }
  0x9b   : > { %554 = vmatprep.subr.mxu0 %v393_v44  ;;  %625 = vmatprep.subr.mxu1 %v395_v55  ;;  %v1500_v12 = vld [vmem:[%s299_s24] sm:$0xff]  ;;  %v502_v14 = vld [vmem:[%s1415_s15 + $0x3d0] sm:$0xff]  ;;  %v499_v16 = vld [vmem:[%s1415_s15 + $0x3b8] sm:$0xff] }
  0x9c   : > { %555 = vmatpush1.msra.mxu0 %v392_v46  ;;  %626 = vmatpush1.msra.mxu1 %v394_v57  ;;  %v489_v13 = vld [vmem:[%s1415_s15 + $0x368] sm:$0xff]  ;;  %v488_v15 = vld [vmem:[%s1415_s15 + $0x360] sm:$0xff]  ;;  %v498_v18 = vld [vmem:[%s1415_s15 + $0x3b0] sm:$0xff] }
  0x9d   : > { %556 = vmatprep.subr.mxu0 %v389_v48  ;;  %627 = vmatprep.subr.mxu1 %v391_v59  ;;  %v485_v17 = vld [vmem:[%s1415_s15 + $0x348] sm:$0xff]  ;;  %v484_v19 = vld [vmem:[%s1415_s15 + $0x340] sm:$0xff]  ;;  %v495_v20 = vld [vmem:[%s1415_s15 + $0x398] sm:$0xff] }
  0x9e   : > { %557 = vmatpush1.msra.mxu0 %v388_v50  ;;  %628 = vmatpush1.msra.mxu1 %v390_v61  ;;  %v481_v21 = vld [vmem:[%s1415_s15 + $0x328] sm:$0xff]  ;;  %v494_v22 = vld [vmem:[%s1415_s15 + $0x390] sm:$0xff]  ;;  %v480_v23 = vld [vmem:[%s1415_s15 + $0x320] sm:$0xff] }
  0x9f   : > { %558 = vmatprep.subr.mxu0 %v385_v52  ;;  %629 = vmatprep.subr.mxu1 %v387_v63  ;;  %v491_v24 = vld [vmem:[%s1415_s15 + $0x378] sm:$0xff]  ;;  %v477_v25 = vld [vmem:[%s1415_s15 + $0x308] sm:$0xff]  ;;  %v490_v26 = vld [vmem:[%s1415_s15 + $0x370] sm:$0xff] }
  0xa0   : > { %559 = vmatpush1.msra.mxu0 %v384_v54  ;;  %630 = vmatpush1.msra.mxu1 %v386_v1  ;;  %v476_v27 = vld [vmem:[%s1415_s15 + $0x300] sm:$0xff]  ;;  %v487_v28 = vld [vmem:[%s1415_s15 + $0x358] sm:$0xff]  ;;  %v473_v29 = vld [vmem:[%s1415_s15 + $0x2e8] sm:$0xff] }
  0xa1   : > { %560 = vmatprep.subr.mxu0 %v381_v56  ;;  %631 = vmatprep.subr.mxu1 %v383_v3  ;;  %v486_v30 = vld [vmem:[%s1415_s15 + $0x350] sm:$0xff]  ;;  %v472_v31 = vld [vmem:[%s1415_s15 + $0x2e0] sm:$0xff]  ;;  %v483_v32 = vld [vmem:[%s1415_s15 + $0x338] sm:$0xff]  ;;  %v510_v3 = vlaneseq }
  0xa2   : > { %561 = vmatpush1.msra.mxu0 %v380_v58  ;;  %632 = vmatpush1.msra.mxu1 %v382_v5  ;;  %v469_v33 = vld [vmem:[%s1415_s15 + $0x2c8] sm:$0xff]  ;;  %v482_v34 = vld [vmem:[%s1415_s15 + $0x330] sm:$0xff]  ;;  %v468_v35 = vld [vmem:[%s1415_s15 + $0x2c0] sm:$0xff] }
  0xa3   : > { %562 = vmatprep.subr.mxu0 %v505_v60  ;;  %633 = vmatprep.subr.mxu1 %v507_v7  ;;  %v479_v36 = vld [vmem:[%s1415_s15 + $0x318] sm:$0xff]  ;;  %v465_v37 = vld [vmem:[%s1415_s15 + $0x2a8] sm:$0xff]  ;;  %v464_v38 = vld [vmem:[%s1415_s15 + $0x2a0] sm:$0xff] }
  0xa4   : > { %563 = vmatpush2.msra.mxu0 %v504_v62  ;;  %634 = vmatpush2.msra.mxu1 %v506_v9  ;;  %v478_v39 = vld [vmem:[%s1415_s15 + $0x310] sm:$0xff]  ;;  %v461_v40 = vld [vmem:[%s1415_s15 + $0x288] sm:$0xff]  ;;  %v475_v41 = vld [vmem:[%s1415_s15 + $0x2f8] sm:$0xff] }
  0xa5   : > { %564 = vmatprep.subr.mxu0 %v501_v0  ;;  %635 = vmatprep.subr.mxu1 %v503_v11  ;;  %v460_v42 = vld [vmem:[%s1415_s15 + $0x280] sm:$0xff]  ;;  %v474_v43 = vld [vmem:[%s1415_s15 + $0x2f0] sm:$0xff]  ;;  %v457_v44 = vld [vmem:[%s1415_s15 + $0x268] sm:$0xff] }
  0xa6   : > { %565 = vmatpush2.msra.mxu0 %v500_v2  ;;  %636 = vmatpush2.msra.mxu1 %v502_v14  ;;  %v471_v45 = vld [vmem:[%s1415_s15 + $0x2d8] sm:$0xff]  ;;  %v456_v46 = vld [vmem:[%s1415_s15 + $0x260] sm:$0xff]  ;;  %v470_v47 = vld [vmem:[%s1415_s15 + $0x2d0] sm:$0xff] }
  0xa7   : > { %566 = vmatprep.subr.mxu0 %v497_v4  ;;  %637 = vmatprep.subr.mxu1 %v499_v16  ;;  %v453_v48 = vld [vmem:[%s1415_s15 + $0x248] sm:$0xff]  ;;  %v467_v49 = vld [vmem:[%s1415_s15 + $0x2b8] sm:$0xff]  ;;  %v452_v50 = vld [vmem:[%s1415_s15 + $0x240] sm:$0xff]  ;;  %v511_v4 = vshrl.u32 %v510_v3, 7 }
  0xa8   : > { %567 = vmatpush2.msra.mxu0 %v496_v6  ;;  %638 = vmatpush2.msra.mxu1 %v498_v18  ;;  %v466_v51 = vld [vmem:[%s1415_s15 + $0x2b0] sm:$0xff]  ;;  %v449_v52 = vld [vmem:[%s1415_s15 + $0x228] sm:$0xff]  ;;  %v463_v53 = vld [vmem:[%s1415_s15 + $0x298] sm:$0xff] }
  0xa9   : > { %568 = vmatprep.subr.mxu0 %v493_v8  ;;  %639 = vmatprep.subr.mxu1 %v495_v20  ;;  %v448_v54 = vld [vmem:[%s1415_s15 + $0x220] sm:$0xff]  ;;  %v462_v55 = vld [vmem:[%s1415_s15 + $0x290] sm:$0xff]  ;;  %v445_v56 = vld [vmem:[%s1415_s15 + $0x208] sm:$0xff]  ;;  %v512_v5 = vsub.s32 0, %v511_v4  ;;  %v516_v7 = vsub.s32 1, %v511_v4  ;;  %v520_v18 = vsub.s32 2, %v511_v4 }
  0xaa   : > { %569 = vmatpush2.msra.mxu0 %v492_v10  ;;  %640 = vmatpush2.msra.mxu1 %v494_v22  ;;  %v459_v57 = vld [vmem:[%s1415_s15 + $0x278] sm:$0xff]  ;;  %v444_v58 = vld [vmem:[%s1415_s15 + $0x200] sm:$0xff]  ;;  %v458_v59 = vld [vmem:[%s1415_s15 + $0x270] sm:$0xff] }
  0xab   : > { %570 = vmatprep.subr.mxu0 %v489_v13  ;;  %641 = vmatprep.subr.mxu1 %v491_v24  ;;  %v378_v60 = vld [vmem:[#allocation2] sm:$0xff]  ;;  %v455_v61 = vld [vmem:[%s1415_s15 + $0x258] sm:$0xff] }
  0xac   : > { %571 = vmatpush2.msra.mxu0 %v488_v15  ;;  %642 = vmatpush2.msra.mxu1 %v490_v26  ;;  %v454_v62 = vld [vmem:[%s1415_s15 + $0x250] sm:$0xff]  ;;  %v451_v63 = vld [vmem:[%s1415_s15 + $0x238] sm:$0xff] }
  0xad   : > { %572 = vmatprep.subr.mxu0 %v485_v17  ;;  %643 = vmatprep.subr.mxu1 %v487_v28  ;;  %v450_v0 = vld [vmem:[%s1415_s15 + $0x230] sm:$0xff]  ;;  %v447_v1 = vld [vmem:[%s1415_s15 + $0x218] sm:$0xff] }
  0xae   : > { %573 = vmatpush2.msra.mxu0 %v484_v19  ;;  %644 = vmatpush2.msra.mxu1 %v486_v30  ;;  %v446_v2 = vld [vmem:[%s1415_s15 + $0x210] sm:$0xff] }
  0xaf   : > { %574 = vmatprep.subr.mxu0 %v481_v21  ;;  %645 = vmatprep.subr.mxu1 %v483_v32  ;;  %v508_v6 = vld [vmem:[%s1413_s10] sm:$0xf] }
  0xb0   : > { %575 = vmatpush2.msra.mxu0 %v480_v23  ;;  %646 = vmatpush2.msra.mxu1 %v482_v34  ;;  %v513_v8 = vrot.slane %v508_v6, %v512_v5  ;;  %v517_v9 = vrot.slane %v508_v6, %v516_v7  ;;  %v521_v21 = vrot.slane %v508_v6, %v520_v18  ;;  %v377_v32 = vld [vmem:[%s308_s11] sm:$0xff] }
  0xb1   : > { %576 = vmatprep.subr.mxu0 %v477_v25  ;;  %647 = vmatprep.subr.mxu1 %v479_v36 }
  0xb2   : > { %577 = vmatpush2.msra.mxu0 %v476_v27  ;;  %594 = vmatprep.mubr.f32.mxu0 %v1500_v12 }
  0xb3   : > { %578 = vmatprep.subr.mxu0 %v473_v29  ;;  %648 = vmatpush2.msra.mxu1 %v478_v39 }
  0xb4   : > { %579 = vmatpush2.msra.mxu0 %v472_v31  ;;  %649 = vmatprep.subr.mxu1 %v475_v41 }
  0xb5   : > { %580 = vmatprep.subr.mxu0 %v469_v33  ;;  %650 = vmatpush2.msra.mxu1 %v474_v43 }
  0xb6   : > { %581 = vmatpush2.msra.mxu0 %v468_v35  ;;  %651 = vmatprep.subr.mxu1 %v471_v45 }
  0xb7   : > { %582 = vmatprep.subr.mxu0 %v465_v37  ;;  %652 = vmatpush2.msra.mxu1 %v470_v47 }
  0xb8   : > { %583 = vmatpush2.msra.mxu0 %v464_v38  ;;  %653 = vmatprep.subr.mxu1 %v467_v49 }
  0xb9   : > { %584 = vmatprep.subr.mxu0 %v461_v40  ;;  %654 = vmatpush2.msra.mxu1 %v466_v51 }
  0xba   : > { %585 = vmatpush2.msra.mxu0 %v460_v42  ;;  %655 = vmatprep.subr.mxu1 %v463_v53 }
  0xbb   : > { %586 = vmatprep.subr.mxu0 %v457_v44  ;;  %656 = vmatpush2.msra.mxu1 %v462_v55 }
  0xbc   : > { %587 = vmatpush2.msra.mxu0 %v456_v46  ;;  %657 = vmatprep.subr.mxu1 %v459_v57 }
  0xbd   : > { %588 = vmatprep.subr.mxu0 %v453_v48  ;;  %658 = vmatpush2.msra.mxu1 %v458_v59 }
  0xbe   : > { %589 = vmatpush2.msra.mxu0 %v452_v50  ;;  %659 = vmatprep.subr.mxu1 %v455_v61 }
  0xbf   : > { %590 = vmatprep.subr.mxu0 %v449_v52  ;;  %660 = vmatpush2.msra.mxu1 %v454_v62 }
  0xc0   : > { %591 = vmatpush2.msra.mxu0 %v448_v54  ;;  %665 = vmatprep.mubr.f32.mxu1 %v1500_v12  ;;  %v524_v12 = vsub.s32 3, %v511_v4 }
  0xc1   : > { %592 = vmatprep.subr.mxu0 %v445_v56  ;;  %661 = vmatprep.subr.mxu1 %v451_v63 }
  0xc2   : > { %593 = vmatpush2.msra.mxu0 %v444_v58  ;;  %662 = vmatpush2.msra.mxu1 %v450_v0  ;;  %v525_v19 = vrot.slane %v508_v6, %v524_v12 }
  0xc3   : > { %595 = vmatmul.mubr.f32.vlgmr.msra.gmra.mxu0 %v378_v60  ;;  %663 = vmatprep.subr.mxu1 %v447_v1 }
  0xc4   : > { %664 = vmatpush2.msra.mxu1 %v446_v2 }
  0xc5   : > { %666 = vmatmul.mubr.f32.vlgmr.msra.gmra.mxu1 %v378_v60 }
 0x183   : > { %v596_v10 = vpop.f32.mrf.mxu0 }
 0x184   : > { %v597_v11 = vadd.f32 %v596_v10, %v513_v8 }
 0x185   : > { %v598_v13 = vpop.f32.mrf.mxu0  ;;  %v667_v17 = vpop.f32.mrf.mxu1 }
 0x186   : > { %v911_v14 = vmul.f32 -1.442695, %v597_v11  ;;  %v599_v15 = vadd.f32 %v598_v13, %v517_v9  ;;  %v668_v23 = vadd.f32 %v667_v17, %v521_v21 }
 0x187   : > { %v669_v20 = vpop.f32.mrf.mxu1 }
 0x188   : > { %985 = vpow2.f32 %v911_v14  ;;  %v912_v16 = vmul.f32 -1.442695, %v599_v15  ;;  %v670_v22 = vadd.f32 %v669_v20, %v525_v19 }
 0x18a   : > { %987 = vpow2.f32 %v912_v16  ;;  %v913_v24 = vmul.f32 -1.442695, %v670_v22 }
 0x18b   : > { %989 = vtanh.f32 %v668_v23 }
 0x18c   : > { %991 = vpow2.f32 %v913_v24 }
 0x195   : > { %v986_v25 = vpop.eup %985 }
 0x196   : > { %v675_v26 = vadd.f32 1.0, %v986_v25 }
 0x197   : > { %v988_v27 = vpop.eup %987 }
 0x198   : > { %993 = vrcp.f32 %v675_v26  ;;  %v681_v28 = vadd.f32 1.0, %v988_v27  ;;  %v990_v29 = vpop.eup %989 }
 0x199   : > { %v992_v30 = vpop.eup %991 }
 0x19a   : > { %995 = vrcp.f32 %v681_v28  ;;  %v688_v34 = vadd.f32 1.0, %v992_v30 }
 0x19c   : > { %997 = vrcp.f32 %v688_v34 }
 0x1a5   : > { %v994_v31 = vpop.eup %993 }
 0x1a6   : > { %v692_v36 = vmul.f32 %v994_v31, %v990_v29 }
 0x1a7   : > { %v996_v33 = vpop.eup %995 }
 0x1a8   : > { %v691_v35 = vmul.f32 %v996_v33, %v377_v32 }
 0x1a9   : > { %v998_v38 = vpop.eup %997 }
 0x1aa   : > { %v693_v37 = vadd.f32 %v692_v36, %v691_v35 }
 0x1ac   : > { %999 = vtanh.f32 %v693_v37  ;;  %697 = vst [vmem:[%s364_s20] sm:$0xff] %v693_v37 }
 0x1b8   : > { %702 = sbr.rel (%p914_p8) target bundleno = 446 (0x1be), region = 60 }
 0x1b9   : > { %v1000_v39 = vpop.eup %999 }
 0x1ba   : > { %v695_v40 = vmul.f32 %v1000_v39, %v998_v38 }
 0x1bc   : > { %696 = vst [vmem:[%s357_s19] sm:$0xff] %v695_v40 }
 0x1bd   : > { %703 = vst [vmem:[#allocation2] sm:$0xff] %v695_v40 }
 0x1be PF: > { %s917_s2 = sshll.u32 %s1248_s25, 7  ;;  %s723_s26 = sshll.u32 %s357_s19, 4  ;;  %s724_s26 = int_to_ptr.vmem [resolvable:$true] %s723_s26 }
 0x1bf   : > { %s721_s13 = scalar_lea.hbm %s1631_s5, %s917_s2  ;;  %s705_s11 = scalar_lea.sflag [#allocation5], %s1390_s29 }
 0x1c0   : > { %s1085_s23 = scalar_lea.vmem %s724_s26, 128  ;;  %p1657_p0 = scmp.ne.s32.totalorder %s1647_s8, 0 }
 0x1c1   : > { %p1086_p10 = scmp.ne.s32.totalorder %s724_s26, %s1085_s23  ;;  %s1190_s30 = smov [#allocation9]  }
 0x1c2   : > { %s1089_s27 = sshll.u32 %s1190_s30, 4  ;;  %s1090_s27 = int_to_ptr.vmem [resolvable:$false] %s1089_s27 }
 0x1c3   : > { %p1087_p2 = pnand %p1086_p10, %p1657_p0  ;;  %s1091_s28 = scalar_lea.vmem %s1090_s27, 256 }
 0x1c4   : > { %p1092_p3 = scmp.lt.s32.totalorder %s724_s26, %s1090_s27  ;;  %p1093_p6 = scmp.lt.s32.totalorder %s1091_s28, %s1085_s23 }
 0x1c5   : > { %p1088_p9 = pneg %p1087_p2 }
 0x1c6   : > { %p1094_p12 = por %p1093_p6, %p1092_p3 }
 0x1c8   : > { %p1095_p4 = pnand %p1094_p12, %p1088_p9 }
 0x1ca   : > { %1098 = shalt.err (!%p1095_p4)
}
 0x1cb   : > { %s1099_s16 = scalar_lea.hbm %s721_s13, 128  ;;  %s1103_s19 = scalar_lea.hbm %s1631_s5, 256 }
 0x1cc   : > { %p1100_p5 = scmp.ne.s32.totalorder %s721_s13, %s1099_s16  ;;  %p1104_p13 = scmp.lt.s32.totalorder %s721_s13, %s1631_s5 }
 0x1cd   : > { %p1105_p11 = scmp.lt.s32.totalorder %s1103_s19, %s1099_s16 }
 0x1ce   : > { %p1101_p1 = pnand %p1100_p5, %p1657_p0 }
 0x1cf   : > { %p1106_p8 = por %p1105_p11, %p1104_p13 }
 0x1d0   : > { %p1102_p7 = pneg %p1101_p1 }
 0x1d2   : > { %p1107_p10 = pnand %p1106_p8, %p1102_p7 }
 0x1d4   : > { %1110 = shalt.err (!%p1107_p10)
}
 0x1d5   : > { %928 = dma.vmem_to_hbm [thread:$0]  (%p1657_p0), %s724_s26, 128, %s721_s13, %s705_s11  }
 0x1d6   : > { %s734_s24 = scalar_lea.hbm %s1632_s6, %s917_s2  ;;  %s736_s23 = sshll.u32 %s364_s20, 4  ;;  %s737_s23 = int_to_ptr.vmem [resolvable:$true] %s736_s23 }
 0x1d7   : > { %s710_s30 = scalar_lea.sflag [#allocation11], %s1390_s29  ;;  %s1111_s27 = scalar_lea.vmem %s737_s23, 128 }
 0x1d8   : > { %p1112_p2 = scmp.ne.s32.totalorder %s737_s23, %s1111_s27  ;;  %s1191_s28 = smov [#allocation10]  }
 0x1d9   : > { %s1115_s16 = sshll.u32 %s1191_s28, 4  ;;  %s1116_s16 = int_to_ptr.vmem [resolvable:$false] %s1115_s16 }
 0x1da   : > { %p1113_p9 = pnand %p1112_p2, %p1657_p0  ;;  %s1117_s10 = scalar_lea.vmem %s1116_s16, 256 }
 0x1db   : > { %p1118_p6 = scmp.lt.s32.totalorder %s737_s23, %s1116_s16  ;;  %p1119_p12 = scmp.lt.s32.totalorder %s1117_s10, %s1111_s27 }
 0x1dc   : > { %p1114_p3 = pneg %p1113_p9 }
 0x1dd   : > { %p1120_p4 = por %p1119_p12, %p1118_p6 }
 0x1df   : > { %p1121_p5 = pnand %p1120_p4, %p1114_p3 }
 0x1e1   : > { %1124 = shalt.err (!%p1121_p5)
}
 0x1e2   : > { %s1125_s25 = scalar_lea.hbm %s734_s24, 128  ;;  %s1129_s20 = scalar_lea.hbm %s1632_s6, 256 }
 0x1e3   : > { %p1126_p1 = scmp.ne.s32.totalorder %s734_s24, %s1125_s25  ;;  %p1130_p11 = scmp.lt.s32.totalorder %s734_s24, %s1632_s6 }
 0x1e4   : > { %p1131_p8 = scmp.lt.s32.totalorder %s1129_s20, %s1125_s25 }
 0x1e5   : > { %p1127_p7 = pnand %p1126_p1, %p1657_p0 }
 0x1e6   : > { %p1132_p10 = por %p1131_p8, %p1130_p11 }
 0x1e7   : > { %p1128_p13 = pneg %p1127_p7 }
 0x1e9   : > { %p1133_p2 = pnand %p1132_p10, %p1128_p13 }
 0x1eb   : > { %1136 = shalt.err (!%p1133_p2)
}
 0x1ec   : > { %929 = dma.vmem_to_hbm [thread:$0]  (%p1657_p0), %s737_s23, 128, %s734_s24, %s710_s30  }
 0x1ed PF: > { %s1658_s26 = sld [smem:[#allocation17_spill]]  ;;  %s748_s11 = sand.u32 1, %s1171_s21  }
 0x1ee   : > { %p1659_p9 = scmp.ne.s32.totalorder %s1648_s9, 0  ;;  %s749_s15 = scalar_lea.sflag [#allocation5], %s748_s11 }
 0x1f3   : > { %p1660_p3 = scmp.ge.s32.totalorder %s1658_s26, 2 }
 0x1f5   : > { %p943_p6 = pnand %p1660_p3, %p1659_p9 }
 0x1f7   : > { %p944_p12 = pneg %p943_p6 }
 0x1f9   : > { %1162 = dma.done.wait (%p944_p12), %s749_s15, 128  }
 0x1fa   : > { %1164 = vsyncadd (%p944_p12), %s749_s15, 4294967168  ;;  %s758_s19 = scalar_lea.sflag [#allocation11], %s748_s11 }
 0x1fb   : > { %1166 = dma.done.wait (%p944_p12), %s758_s19, 128  }
 0x1fc   : > { %1168 = vsyncadd (%p944_p12), %s758_s19, 4294967168  ;;  %s1661_s24 = sld [smem:[#allocation18_spill]]  ;;  %s1664_s21 = smov %s1175_s22 }
 0x1fd   : > { %s1662_s7 = sld [smem:[#allocation16_spill]] }
 0x1fe   : > { %s1663_s23 = sld [smem:[#allocation19_spill]] }
 0x202   : > { %p26_p0 = scmp.ge.s32.totalorder %s1661_s24, 4  }
 0x203   : > { %s1665_s22 = smov %s1662_s7 }
 0x204   :  { %28 = sbr.rel (!%p26_p0) target bundleno = 11 (0xb), region = 137 }
 0x209   :  { %763 = vsyncpa [#allocation4], 1 }
 0x20a   :  { %765 = vsyncpa [#allocation4 + $0x1], 1 }
 0x20b   :  { %766 = vsyncpa [#allocation7], 1 }
 0x20c   :  { %768 = vsyncpa [#allocation7 + $0x1], 1 }
 0x20d   :  { %769 = vsyncpa [#allocation5], 1 }
 0x20e   :  { %771 = vsyncpa [#allocation5 + $0x1], 1 }
 0x20f   :  { %772 = vsyncpa [#allocation11], 1 }
 0x210   :  { %774 = vsyncpa [#allocation11 + $0x1], 1 }

</bundles_post_ra>
